<compile_context>
chip_gen: v6e
topology: v6e:2x2x1
jax: 0.10.0
libtpu: 0.0.40
codegen_flags: <defaults>
</compile_context>

<pallas_src>
import functools

import jax
import jax.numpy as jnp
from jax import lax
from jax.experimental import pallas as pl
from jax.experimental.pallas import tpu as pltpu

LANES = 128
# <= 48 MB stays under v7x's 64 MiB physical VMEM; blocks here need far less.
# (v5e/v6e could go to 64-96 MB but there is nothing to gain at these tiles.)
_VMEM_LIMIT = 48 * 1024 * 1024


def _fold_bn(weight_oihw, gamma, beta, mean, var, eps=1e-5):
    """Fold eval-mode BatchNorm into conv weights (scale) + a bias vector."""
    scale = gamma * lax.rsqrt(var + eps)                 # (Cout,)
    w = weight_oihw * scale[:, None, None, None]
    b = beta - mean * scale
    return w.astype(jnp.float32), b.astype(jnp.float32)


def _pack_factor(channels, rows):
    """How many spatial positions to pack per 128-lane output row."""
    if channels >= LANES or LANES % channels != 0:
        return 1
    p = LANES // channels
    while p > 1 and rows % p != 0:
        p //= 2
    return p


def _block_diag(w, p):
    """(K, C) -> (p*K, p*C) block diagonal.  One matmul then emits p packed
    spatial positions per output row: lane-dense stores, zero dead HBM bytes,
    and the packed buffer is bit-identical to the dense row-major (M, C)
    layout (all downstream reshapes are free)."""
    if p == 1:
        return w
    k, c = w.shape
    eye = jnp.eye(p, dtype=w.dtype)
    return (eye[:, None, :, None] * w[None, :, None, :]).reshape(p * k, p * c)


def _im2col_3x3_s2(x_nhwc):
    """Patch matrix for a 3x3 / stride-2 / pad-1 conv; tap order (kh, kw, c).
    Hoisted to the wrapper so the Pallas kernel is a pure matmul (no
    low-lane-utilization tap copies in-kernel)."""
    n, h, w, c = x_nhwc.shape
    xp = jnp.pad(x_nhwc, ((0, 0), (1, 1), (1, 1), (0, 0)))
    taps = [xp[:, kh:kh + h:2, kw:kw + w:2, :]
            for kh in range(3) for kw in range(3)]
    return jnp.concatenate(taps, axis=-1)                # (n, h//2, w//2, 9*c)


# ---------------------------------------------------------------------------
# Generic kernel: matmul + bias + ReLU (used by stem1, stem2a, stem2b)
# ---------------------------------------------------------------------------
def _mm_bias_act_kernel(x_ref, w_ref, b_ref, o_ref, *, activation):
    acc = jnp.dot(x_ref[...], w_ref[...], preferred_element_type=jnp.float32)
    y = acc + b_ref[...]
    if activation:
        y = jnp.maximum(y, 0.0)
    o_ref[...] = y.astype(o_ref.dtype)


def _matmul_bias_act(x2d, wmat, bias, *, activation=True,
                     out_dtype=jnp.bfloat16, block_rows=1024):
    """y = act(x @ w + b), bf16 operands / f32 accumulation, row-block grid."""
    x2d = x2d.astype(jnp.bfloat16)
    wmat = wmat.astype(jnp.bfloat16)
    bias = bias.astype(jnp.float32)
    m, k = x2d.shape
    n = wmat.shape[1]
    tm = m if m <= block_rows else block_rows            # multiple of 8 or full
    return pl.pallas_call(
        functools.partial(_mm_bias_act_kernel, activation=activation),
        out_shape=jax.ShapeDtypeStruct((m, n), out_dtype),
        grid_spec=pltpu.PrefetchScalarGridSpec(
            num_scalar_prefetch=0,
            grid=(pl.cdiv(m, tm),),
            in_specs=[
                pl.BlockSpec((tm, k), lambda i: (i, 0)),
                pl.BlockSpec((k, n), lambda i: (0, 0)),
                pl.BlockSpec((1, n), lambda i: (0, 0)),
            ],
            out_specs=pl.BlockSpec((tm, n), lambda i: (i, 0)),
        ),
        compiler_params=pltpu.CompilerParams(
            dimension_semantics=("parallel",),
            vmem_limit_bytes=_VMEM_LIMIT),
    )(x2d, wmat, bias)


# ---------------------------------------------------------------------------
# Conv wrappers built on the generic kernel
# ---------------------------------------------------------------------------
def _conv3x3_s2_bn_relu(x_nhwc, weight_oihw, gamma, beta, mean, var,
                        eps=1e-5, activation=True):
    """Conv2d(k=3, s=2, p=1, bias=False) + BN(eval) + ReLU (NHWC in/out)."""
    n, h, w, cin = x_nhwc.shape
    assert h % 2 == 0 and w % 2 == 0
    cout = weight_oihw.shape[0]
    ho, wo = h // 2, w // 2
    m = n * ho * wo
    p = _pack_factor(cout, m)

    patches = _im2col_3x3_s2(x_nhwc.astype(jnp.bfloat16))      # (n,ho,wo,9*cin)
    wf, bf = _fold_bn(weight_oihw, gamma, beta, mean, var, eps)
    wmat = wf.transpose(2, 3, 1, 0).reshape(9 * cin, cout)     # (kh,kw,ci) order
    out = _matmul_bias_act(
        patches.reshape(m // p, p * 9 * cin),                  # free reshape
        _block_diag(wmat, p),
        jnp.tile(bf, p).reshape(1, p * cout),
        activation=activation)
    return out.reshape(n, ho, wo, cout)                        # free reshape


def _conv1x1_bn_relu(x_nhwc, weight_oihw, gamma, beta, mean, var,
                     eps=1e-5, activation=True):
    """Conv2d(k=1, bias=False) + BN(eval) + ReLU (NHWC in/out)."""
    n, h, w, cin = x_nhwc.shape
    cout = weight_oihw.shape[0]
    m = n * h * w
    p = _pack_factor(cout, m)

    wf, bf = _fold_bn(weight_oihw, gamma, beta, mean, var, eps)
    wmat = wf[:, :, 0, 0].T                                    # (cin, cout)
    out = _matmul_bias_act(
        x_nhwc.reshape(m // p, p * cin),                       # free reshape
        _block_diag(wmat, p),
        jnp.tile(bf, p).reshape(1, p * cout),
        activation=activation)
    return out.reshape(n, h, w, cout)


# ---------------------------------------------------------------------------
# Kernel 3: maxpool2x2 + channel-concat + 1x1 conv + bias + ReLU (stem3)
# ---------------------------------------------------------------------------
def _stem3_kernel(p_ref, b2_ref, w1_ref, w2_ref, b_ref, o_ref, *, activation):
    """p_ref:  (1, TR, 2, Wo, 2*F)  out1 with pooling window grouped
               (H-pair explicit, W-pair folded into lanes)
       b2_ref: (1, TR, Wo, F)       out2b
       out = relu(pool(out1) @ W1 + out2b @ W2 + bias)  (== concat + 1x1)"""
    _, tr, _, wo, f2 = p_ref.shape
    f = f2 // 2
    cout = o_ref.shape[-1]
    x = p_ref[0]                                       # (TR, 2, Wo, 2F)
    hmax = jnp.maximum(x[:, 0], x[:, 1])               # max over H pair
    b1 = jnp.maximum(hmax[..., :f], hmax[..., f:])     # max over W pair (lanes)
    m = tr * wo
    # Two K=F dots.  The "single K=2F dot" suggestion only pays when each half
    # is already 128 lanes; with dense 32-channel operands both variants
    # under-fill the MXU depth equally and the lane-concat would cost a copy.
    acc = jnp.dot(b1.reshape(m, f), w1_ref[...],
                  preferred_element_type=jnp.float32)
    acc = acc + jnp.dot(b2_ref[0].reshape(m, b2_ref.shape[-1]), w2_ref[...],
                        preferred_element_type=jnp.float32)
    y = acc + b_ref[...]
    if activation:
        y = jnp.maximum(y, 0.0)
    o_ref[0] = y.reshape(tr, wo, cout).astype(o_ref.dtype)


def _stem3_pool_concat_1x1(out1_nhwc, out2b_nhwc, weight_oihw, gamma, beta,
                           mean, var, eps=1e-5, activation=True,
                           out_dtype=jnp.float32, row_block=32):
    n, h1, w1, f = out1_nhwc.shape
    _, ho, wo, fb = out2b_nhwc.shape
    assert h1 == 2 * ho and w1 == 2 * wo
    cout = weight_oihw.shape[0]

    wf, bf = _fold_bn(weight_oihw, gamma, beta, mean, var, eps)
    w31 = wf[:, :f, 0, 0].T.astype(jnp.bfloat16)       # pooled-out1 branch
    w32 = wf[:, f:, 0, 0].T.astype(jnp.bfloat16)       # out2b branch
    bias = bf.reshape(1, cout).astype(jnp.float32)

    # Free reshape: H-pair explicit, W-pair folded into lanes.
    pool_in = out1_nhwc.astype(jnp.bfloat16).reshape(n, ho, 2, wo, 2 * f)
    tr = min(row_block, ho)

    return pl.pallas_call(
        functools.partial(_stem3_kernel, activation=activation),
        out_shape=jax.ShapeDtypeStruct((n, ho, wo, cout), out_dtype),
        grid_spec=pltpu.PrefetchScalarGridSpec(
            num_scalar_prefetch=0,
            grid=(n, pl.cdiv(ho, tr)),
            in_specs=[
                pl.BlockSpec((1, tr, 2, wo, 2 * f), lambda b, r: (b, r, 0, 0, 0)),
                pl.BlockSpec((1, tr, wo, fb), lambda b, r: (b, r, 0, 0)),
                pl.BlockSpec((f, cout), lambda b, r: (0, 0)),
                pl.BlockSpec((fb, cout), lambda b, r: (0, 0)),
                pl.BlockSpec((1, cout), lambda b, r: (0, 0)),
            ],
            out_specs=pl.BlockSpec((1, tr, wo, cout), lambda b, r: (b, r, 0, 0)),
        ),
        compiler_params=pltpu.CompilerParams(
            dimension_semantics=("parallel", "parallel"),
            vmem_limit_bytes=_VMEM_LIMIT),
    )(pool_in, out2b_nhwc.astype(jnp.bfloat16), w31, w32, bias)


# ---------------------------------------------------------------------------
# _StemBlock forward
# ---------------------------------------------------------------------------
def stem_block_forward(x_nchw, params, final_dtype=jnp.float32):
    """params[name] = (weight_oihw, gamma, beta, running_mean, running_var)."""
    n, cin, h, w = x_nchw.shape
    assert h % 4 == 0 and w % 4 == 0, "stride-2 stem stages require H,W % 4 == 0"
    x = jnp.transpose(x_nchw, (0, 2, 3, 1))                     # NCHW -> NHWC

    out1 = _conv3x3_s2_bn_relu(x, *params['stem1'])             # (N,H/2,W/2,F)
    out2a = _conv1x1_bn_relu(out1, *params['stem2a'])           # (N,H/2,W/2,F/2)
    out2b = _conv3x3_s2_bn_relu(out2a, *params['stem2b'])       # (N,H/4,W/4,F)
    out3 = _stem3_pool_concat_1x1(out1, out2b, *params['stem3'],
                                  out_dtype=final_dtype)        # (N,H/4,W/4,F)
    return jnp.transpose(out3, (0, 3, 1, 2))                    # NHWC -> NCHW


# ---------------------------------------------------------------------------
# Pure-JAX reference (matches PyTorch eval-mode semantics)
# ---------------------------------------------------------------------------
def _bn_eval(y, gamma, beta, mean, var, eps=1e-5):
    s = gamma * lax.rsqrt(var + eps)
    return y * s.reshape(1, -1, 1, 1) + (beta - mean * s).reshape(1, -1, 1, 1)


def _basic_conv_ref(x, p, stride, padding, activation=True):
    w, g, b, m, v = p
    y = lax.conv_general_dilated(
        x, w, window_strides=(stride, stride),
        padding=((padding, padding), (padding, padding)),
        dimension_numbers=("NCHW", "OIHW", "NCHW"))
    y = _bn_eval(y, g, b, m, v)
    return jnp.maximum(y, 0.0) if activation else y


def stem_block_ref(x, params):
    out = _basic_conv_ref(x, params['stem1'], 2, 1)
    br2 = _basic_conv_ref(out, params['stem2a'], 1, 0)
    br2 = _basic_conv_ref(br2, params['stem2b'], 2, 1)
    br1 = lax.reduce_window(out, -jnp.inf, lax.max,
                            (1, 1, 2, 2), (1, 1, 2, 2), 'VALID')
    cat = jnp.concatenate([br1, br2], axis=1)
    return _basic_conv_ref(cat, params['stem3'], 1, 0)


if __name__ == "__main__":
    # _StemBlock(num_input_channels=4, num_init_features=32), x: (2, 4, 16, 16)
    N, C_IN, H, W = 2, 4, 16, 16
    F = 32                  # num_init_features
    FS = F // 2             # num_stem_features

    key = jax.random.PRNGKey(0)

    def make_bc_params(k, cin, cout, ksize):
        kw, kg, kb, km, kv = jax.random.split(k, 5)
        w = 0.1 * jax.random.normal(kw, (cout, cin, ksize, ksize), jnp.float32)
        gamma = 1.0 + 0.1 * jax.random.normal(kg, (cout,), jnp.float32)
        beta = 0.1 * jax.random.normal(kb, (cout,), jnp.float32)
        mean = 0.1 * jax.random.normal(km, (cout,), jnp.float32)
        var = jnp.abs(1.0 + 0.1 * jax.random.normal(kv, (cout,), jnp.float32))
        return (w, gamma, beta, mean, var)

    kx, k1, k2a, k2b, k3 = jax.random.split(key, 5)
    x = jax.random.normal(kx, (N, C_IN, H, W), dtype=jnp.float32)
    params = {
        'stem1':  make_bc_params(k1, C_IN, F, 3),
        'stem2a': make_bc_params(k2a, F, FS, 1),
        'stem2b': make_bc_params(k2b, FS, F, 3),
        'stem3':  make_bc_params(k3, 2 * F, F, 1),
    }

    out = jax.jit(stem_block_forward)(x, params)
    out = jax.block_until_ready(out)

    ref = stem_block_ref(x, params)
    assert out.shape == (N, F, H // 4, W // 4), out.shape
    # bf16 matmul operands (f32 accumulation) -> small deviation vs f32 reference
    assert jnp.allclose(out, ref, atol=5e-2, rtol=5e-2), \
        float(jnp.max(jnp.abs(out - ref)))

    print("KERNEL_OK")
</pallas_src>

<mosaic_0001>
module attributes {stable_mosaic.version = 11 : i64} {
  func.func @_mm_bias_act_kernel(%arg0: i32, %arg1: memref<32x144xbf16, #tpu.memory_space<vmem>>, %arg2: memref<144x128xbf16, #tpu.memory_space<vmem>>, %arg3: memref<1x128xf32, #tpu.memory_space<vmem>>, %arg4: memref<32x128xbf16, #tpu.memory_space<vmem>>) attributes {dimension_semantics = [#tpu.dimension_semantics<parallel>], iteration_bounds = array<i64: 1>, scalar_prefetch = 0 : i64, scratch_operands = 0 : i64, tpu.core_type = #tpu.core_type<tc>, window_params = [{transform_indices = @transform_0, window_bounds = array<i64: 32, 144>}, {pipeline_mode = #tpu.pipeline_mode<synchronous>, transform_indices = @transform_1, window_bounds = array<i64: 144, 128>}, {pipeline_mode = #tpu.pipeline_mode<synchronous>, transform_indices = @transform_2, window_bounds = array<i64: 1, 128>}, {transform_indices = @transform_3, window_bounds = array<i64: 32, 128>}]} {
    %c0 = arith.constant 0 : index
    %c0_0 = arith.constant 0 : index
    %0 = vector.load %arg1[%c0, %c0_0] : memref<32x144xbf16, #tpu.memory_space<vmem>>, vector<32x144xbf16>
    %c0_1 = arith.constant 0 : index
    %c0_2 = arith.constant 0 : index
    %1 = vector.load %arg2[%c0_1, %c0_2] : memref<144x128xbf16, #tpu.memory_space<vmem>>, vector<144x128xbf16>
    %cst = arith.constant dense<0.000000e+00> : vector<32x128xf32>
    %2 = tpu.matmul %0, %1, %cst {dimension_numbers = #tpu.dot_dimension_numbers<[1], [0], [0], [1], [0, 0, 1, 1], [], []>} : vector<32x144xbf16>, vector<144x128xbf16>, vector<32x128xf32> -> vector<32x128xf32>
    %c0_3 = arith.constant 0 : index
    %c0_4 = arith.constant 0 : index
    %3 = vector.load %arg3[%c0_3, %c0_4] : memref<1x128xf32, #tpu.memory_space<vmem>>, vector<1x128xf32>
    %4 = vector.broadcast %3 : vector<1x128xf32> to vector<32x128xf32>
    %5 = arith.addf %2, %4 : vector<32x128xf32>
    %cst_5 = arith.constant 0.000000e+00 : f32
    %6 = vector.broadcast %cst_5 : f32 to vector<32x128xf32>
    %7 = arith.maximumf %5, %6 : vector<32x128xf32>
    %8 = arith.truncf %7 : vector<32x128xf32> to vector<32x128xbf16>
    %c0_6 = arith.constant 0 : index
    %c0_7 = arith.constant 0 : index
    %9 = vector.load %arg4[%c0_6, %c0_7] : memref<32x128xbf16, #tpu.memory_space<vmem>>, vector<32x128xbf16>
    tpu.vector_store %arg4[%c0_6, %c0_7], %8 {strides = array<i32>} : memref<32x128xbf16, #tpu.memory_space<vmem>>, vector<32x128xbf16>,
    return
  }
  func.func @transform_0(%arg0: i32) -> (i32, i32) {
    %c0_i32 = arith.constant 0 : i32
    %c0_i32_0 = arith.constant 0 : i32
    return %arg0, %c0_i32 : i32, i32
  }
  func.func @transform_1(%arg0: i32) -> (i32, i32) {
    %c0_i32 = arith.constant 0 : i32
    %c0_i32_0 = arith.constant 0 : i32
    %c0_i32_1 = arith.constant 0 : i32
    return %c0_i32, %c0_i32_0 : i32, i32
  }
  func.func @transform_2(%arg0: i32) -> (i32, i32) {
    %c0_i32 = arith.constant 0 : i32
    %c0_i32_0 = arith.constant 0 : i32
    %c0_i32_1 = arith.constant 0 : i32
    return %c0_i32, %c0_i32_0 : i32, i32
  }
  func.func @transform_3(%arg0: i32) -> (i32, i32) {
    %c0_i32 = arith.constant 0 : i32
    %c0_i32_0 = arith.constant 0 : i32
    return %arg0, %c0_i32 : i32, i32
  }
}

module attributes {stable_mosaic.version = 11 : i64} {
  func.func @_mm_bias_act_kernel(%arg0: i32, %arg1: memref<16x256xbf16, #tpu.memory_space<vmem>>, %arg2: memref<256x128xbf16, #tpu.memory_space<vmem>>, %arg3: memref<1x128xf32, #tpu.memory_space<vmem>>, %arg4: memref<16x128xbf16, #tpu.memory_space<vmem>>) attributes {dimension_semantics = [#tpu.dimension_semantics<parallel>], iteration_bounds = array<i64: 1>, scalar_prefetch = 0 : i64, scratch_operands = 0 : i64, tpu.core_type = #tpu.core_type<tc>, window_params = [{transform_indices = @transform_0, window_bounds = array<i64: 16, 256>}, {pipeline_mode = #tpu.pipeline_mode<synchronous>, transform_indices = @transform_1, window_bounds = array<i64: 256, 128>}, {pipeline_mode = #tpu.pipeline_mode<synchronous>, transform_indices = @transform_2, window_bounds = array<i64: 1, 128>}, {transform_indices = @transform_3, window_bounds = array<i64: 16, 128>}]} {
    %c0 = arith.constant 0 : index
    %c0_0 = arith.constant 0 : index
    %0 = vector.load %arg1[%c0, %c0_0] : memref<16x256xbf16, #tpu.memory_space<vmem>>, vector<16x256xbf16>
    %c0_1 = arith.constant 0 : index
    %c0_2 = arith.constant 0 : index
    %1 = vector.load %arg2[%c0_1, %c0_2] : memref<256x128xbf16, #tpu.memory_space<vmem>>, vector<256x128xbf16>
    %cst = arith.constant dense<0.000000e+00> : vector<16x128xf32>
    %2 = tpu.matmul %0, %1, %cst {dimension_numbers = #tpu.dot_dimension_numbers<[1], [0], [0], [1], [0, 0, 1, 1], [], []>} : vector<16x256xbf16>, vector<256x128xbf16>, vector<16x128xf32> -> vector<16x128xf32>
    %c0_3 = arith.constant 0 : index
    %c0_4 = arith.constant 0 : index
    %3 = vector.load %arg3[%c0_3, %c0_4] : memref<1x128xf32, #tpu.memory_space<vmem>>, vector<1x128xf32>
    %4 = vector.broadcast %3 : vector<1x128xf32> to vector<16x128xf32>
    %5 = arith.addf %2, %4 : vector<16x128xf32>
    %cst_5 = arith.constant 0.000000e+00 : f32
    %6 = vector.broadcast %cst_5 : f32 to vector<16x128xf32>
    %7 = arith.maximumf %5, %6 : vector<16x128xf32>
    %8 = arith.truncf %7 : vector<16x128xf32> to vector<16x128xbf16>
    %c0_6 = arith.constant 0 : index
    %c0_7 = arith.constant 0 : index
    %9 = vector.load %arg4[%c0_6, %c0_7] : memref<16x128xbf16, #tpu.memory_space<vmem>>, vector<16x128xbf16>
    tpu.vector_store %arg4[%c0_6, %c0_7], %8 {strides = array<i32>} : memref<16x128xbf16, #tpu.memory_space<vmem>>, vector<16x128xbf16>,
    return
  }
  func.func @transform_0(%arg0: i32) -> (i32, i32) {
    %c0_i32 = arith.constant 0 : i32
    %c0_i32_0 = arith.constant 0 : i32
    return %arg0, %c0_i32 : i32, i32
  }
  func.func @transform_1(%arg0: i32) -> (i32, i32) {
    %c0_i32 = arith.constant 0 : i32
    %c0_i32_0 = arith.constant 0 : i32
    %c0_i32_1 = arith.constant 0 : i32
    return %c0_i32, %c0_i32_0 : i32, i32
  }
  func.func @transform_2(%arg0: i32) -> (i32, i32) {
    %c0_i32 = arith.constant 0 : i32
    %c0_i32_0 = arith.constant 0 : i32
    %c0_i32_1 = arith.constant 0 : i32
    return %c0_i32, %c0_i32_0 : i32, i32
  }
  func.func @transform_3(%arg0: i32) -> (i32, i32) {
    %c0_i32 = arith.constant 0 : i32
    %c0_i32_0 = arith.constant 0 : i32
    return %arg0, %c0_i32 : i32, i32
  }
}

module attributes {stable_mosaic.version = 11 : i64} {
  func.func @_mm_bias_act_kernel(%arg0: i32, %arg1: memref<8x576xbf16, #tpu.memory_space<vmem>>, %arg2: memref<576x128xbf16, #tpu.memory_space<vmem>>, %arg3: memref<1x128xf32, #tpu.memory_space<vmem>>, %arg4: memref<8x128xbf16, #tpu.memory_space<vmem>>) attributes {dimension_semantics = [#tpu.dimension_semantics<parallel>], iteration_bounds = array<i64: 1>, scalar_prefetch = 0 : i64, scratch_operands = 0 : i64, tpu.core_type = #tpu.core_type<tc>, window_params = [{transform_indices = @transform_0, window_bounds = array<i64: 8, 576>}, {pipeline_mode = #tpu.pipeline_mode<synchronous>, transform_indices = @transform_1, window_bounds = array<i64: 576, 128>}, {pipeline_mode = #tpu.pipeline_mode<synchronous>, transform_indices = @transform_2, window_bounds = array<i64: 1, 128>}, {transform_indices = @transform_3, window_bounds = array<i64: 8, 128>}]} {
    %c0 = arith.constant 0 : index
    %c0_0 = arith.constant 0 : index
    %0 = vector.load %arg1[%c0, %c0_0] : memref<8x576xbf16, #tpu.memory_space<vmem>>, vector<8x576xbf16>
    %c0_1 = arith.constant 0 : index
    %c0_2 = arith.constant 0 : index
    %1 = vector.load %arg2[%c0_1, %c0_2] : memref<576x128xbf16, #tpu.memory_space<vmem>>, vector<576x128xbf16>
    %cst = arith.constant dense<0.000000e+00> : vector<8x128xf32>
    %2 = tpu.matmul %0, %1, %cst {dimension_numbers = #tpu.dot_dimension_numbers<[1], [0], [0], [1], [0, 0, 1, 1], [], []>} : vector<8x576xbf16>, vector<576x128xbf16>, vector<8x128xf32> -> vector<8x128xf32>
    %c0_3 = arith.constant 0 : index
    %c0_4 = arith.constant 0 : index
    %3 = vector.load %arg3[%c0_3, %c0_4] : memref<1x128xf32, #tpu.memory_space<vmem>>, vector<1x128xf32>
    %4 = vector.broadcast %3 : vector<1x128xf32> to vector<8x128xf32>
    %5 = arith.addf %2, %4 : vector<8x128xf32>
    %cst_5 = arith.constant 0.000000e+00 : f32
    %6 = vector.broadcast %cst_5 : f32 to vector<8x128xf32>
    %7 = arith.maximumf %5, %6 : vector<8x128xf32>
    %8 = arith.truncf %7 : vector<8x128xf32> to vector<8x128xbf16>
    %c0_6 = arith.constant 0 : index
    %c0_7 = arith.constant 0 : index
    %9 = vector.load %arg4[%c0_6, %c0_7] : memref<8x128xbf16, #tpu.memory_space<vmem>>, vector<8x128xbf16>
    tpu.vector_store %arg4[%c0_6, %c0_7], %8 {strides = array<i32>} : memref<8x128xbf16, #tpu.memory_space<vmem>>, vector<8x128xbf16>,
    return
  }
  func.func @transform_0(%arg0: i32) -> (i32, i32) {
    %c0_i32 = arith.constant 0 : i32
    %c0_i32_0 = arith.constant 0 : i32
    return %arg0, %c0_i32 : i32, i32
  }
  func.func @transform_1(%arg0: i32) -> (i32, i32) {
    %c0_i32 = arith.constant 0 : i32
    %c0_i32_0 = arith.constant 0 : i32
    %c0_i32_1 = arith.constant 0 : i32
    return %c0_i32, %c0_i32_0 : i32, i32
  }
  func.func @transform_2(%arg0: i32) -> (i32, i32) {
    %c0_i32 = arith.constant 0 : i32
    %c0_i32_0 = arith.constant 0 : i32
    %c0_i32_1 = arith.constant 0 : i32
    return %c0_i32, %c0_i32_0 : i32, i32
  }
  func.func @transform_3(%arg0: i32) -> (i32, i32) {
    %c0_i32 = arith.constant 0 : i32
    %c0_i32_0 = arith.constant 0 : i32
    return %arg0, %c0_i32 : i32, i32
  }
}

module attributes {stable_mosaic.version = 11 : i64} {
  func.func @_stem3_kernel(%arg0: i32, %arg1: i32, %arg2: memref<1x4x2x4x64xbf16, #tpu.memory_space<vmem>>, %arg3: memref<1x4x4x32xbf16, #tpu.memory_space<vmem>>, %arg4: memref<32x32xbf16, #tpu.memory_space<vmem>>, %arg5: memref<32x32xbf16, #tpu.memory_space<vmem>>, %arg6: memref<1x32xf32, #tpu.memory_space<vmem>>, %arg7: memref<1x4x4x32xf32, #tpu.memory_space<vmem>>) attributes {dimension_semantics = [#tpu.dimension_semantics<parallel>, #tpu.dimension_semantics<parallel>], iteration_bounds = array<i64: 2, 1>, scalar_prefetch = 0 : i64, scratch_operands = 0 : i64, tpu.core_type = #tpu.core_type<tc>, window_params = [{transform_indices = @transform_0, window_bounds = array<i64: 1, 4, 2, 4, 64>}, {transform_indices = @transform_1, window_bounds = array<i64: 1, 4, 4, 32>}, {pipeline_mode = #tpu.pipeline_mode<synchronous>, transform_indices = @transform_2, window_bounds = array<i64: 32, 32>}, {pipeline_mode = #tpu.pipeline_mode<synchronous>, transform_indices = @transform_3, window_bounds = array<i64: 32, 32>}, {pipeline_mode = #tpu.pipeline_mode<synchronous>, transform_indices = @transform_4, window_bounds = array<i64: 1, 32>}, {transform_indices = @transform_5, window_bounds = array<i64: 1, 4, 4, 32>}]} {
    %c0 = arith.constant 0 : index
    %c0_0 = arith.constant 0 : index
    %c0_1 = arith.constant 0 : index
    %c0_2 = arith.constant 0 : index
    %c0_3 = arith.constant 0 : index
    %0 = vector.load %arg2[%c0, %c0_0, %c0_1, %c0_2, %c0_3] : memref<1x4x2x4x64xbf16, #tpu.memory_space<vmem>>, vector<1x4x2x4x64xbf16>
    %1 = vector.shape_cast %0 : vector<1x4x2x4x64xbf16> to vector<4x2x4x64xbf16>
    %2 = vector.extract_strided_slice %1 {offsets = [0, 0, 0, 0], sizes = [4, 1, 4, 64], strides = [1, 1, 1, 1]} : vector<4x2x4x64xbf16> to vector<4x1x4x64xbf16>
    %3 = vector.shape_cast %2 : vector<4x1x4x64xbf16> to vector<4x4x64xbf16>
    %4 = vector.extract_strided_slice %1 {offsets = [0, 1, 0, 0], sizes = [4, 1, 4, 64], strides = [1, 1, 1, 1]} : vector<4x2x4x64xbf16> to vector<4x1x4x64xbf16>
    %5 = vector.shape_cast %4 : vector<4x1x4x64xbf16> to vector<4x4x64xbf16>
    %6 = arith.maximumf %3, %5 : vector<4x4x64xbf16>
    %7 = vector.extract_strided_slice %6 {offsets = [0, 0, 0], sizes = [4, 4, 32], strides = [1, 1, 1]} : vector<4x4x64xbf16> to vector<4x4x32xbf16>
    %8 = vector.extract_strided_slice %6 {offsets = [0, 0, 32], sizes = [4, 4, 32], strides = [1, 1, 1]} : vector<4x4x64xbf16> to vector<4x4x32xbf16>
    %9 = arith.maximumf %7, %8 : vector<4x4x32xbf16>
    %10 = vector.shape_cast %9 : vector<4x4x32xbf16> to vector<16x32xbf16>
    %c0_4 = arith.constant 0 : index
    %c0_5 = arith.constant 0 : index
    %11 = vector.load %arg4[%c0_4, %c0_5] : memref<32x32xbf16, #tpu.memory_space<vmem>>, vector<32x32xbf16>
    %cst = arith.constant dense<0.000000e+00> : vector<16x32xf32>
    %12 = tpu.matmul %10, %11, %cst {dimension_numbers = #tpu.dot_dimension_numbers<[1], [0], [0], [1], [0, 0, 1, 1], [], []>} : vector<16x32xbf16>, vector<32x32xbf16>, vector<16x32xf32> -> vector<16x32xf32>
    %c0_6 = arith.constant 0 : index
    %c0_7 = arith.constant 0 : index
    %c0_8 = arith.constant 0 : index
    %c0_9 = arith.constant 0 : index
    %13 = vector.load %arg3[%c0_6, %c0_7, %c0_8, %c0_9] : memref<1x4x4x32xbf16, #tpu.memory_space<vmem>>, vector<1x4x4x32xbf16>
    %14 = vector.shape_cast %13 : vector<1x4x4x32xbf16> to vector<4x4x32xbf16>
    %15 = vector.shape_cast %14 : vector<4x4x32xbf16> to vector<16x32xbf16>
    %c0_10 = arith.constant 0 : index
    %c0_11 = arith.constant 0 : index
    %16 = vector.load %arg5[%c0_10, %c0_11] : memref<32x32xbf16, #tpu.memory_space<vmem>>, vector<32x32xbf16>
    %cst_12 = arith.constant dense<0.000000e+00> : vector<16x32xf32>
    %17 = tpu.matmul %15, %16, %cst_12 {dimension_numbers = #tpu.dot_dimension_numbers<[1], [0], [0], [1], [0, 0, 1, 1], [], []>} : vector<16x32xbf16>, vector<32x32xbf16>, vector<16x32xf32> -> vector<16x32xf32>
    %18 = arith.addf %12, %17 : vector<16x32xf32>
    %c0_13 = arith.constant 0 : index
    %c0_14 = arith.constant 0 : index
    %19 = vector.load %arg6[%c0_13, %c0_14] : memref<1x32xf32, #tpu.memory_space<vmem>>, vector<1x32xf32>
    %20 = vector.broadcast %19 : vector<1x32xf32> to vector<16x32xf32>
    %21 = arith.addf %18, %20 : vector<16x32xf32>
    %cst_15 = arith.constant 0.000000e+00 : f32
    %22 = vector.broadcast %cst_15 : f32 to vector<16x32xf32>
    %23 = arith.maximumf %21, %22 : vector<16x32xf32>
    %24 = vector.shape_cast %23 : vector<16x32xf32> to vector<4x4x32xf32>
    %c0_16 = arith.constant 0 : index
    %c0_17 = arith.constant 0 : index
    %c0_18 = arith.constant 0 : index
    %c0_19 = arith.constant 0 : index
    %25 = vector.load %arg7[%c0_16, %c0_17, %c0_18, %c0_19] : memref<1x4x4x32xf32, #tpu.memory_space<vmem>>, vector<1x4x4x32xf32>
    %26 = vector.shape_cast %25 : vector<1x4x4x32xf32> to vector<4x4x32xf32>
    %27 = vector.shape_cast %24 : vector<4x4x32xf32> to vector<1x4x4x32xf32>
    tpu.vector_store %arg7[%c0_16, %c0_17, %c0_18, %c0_19], %27 {strides = array<i32>} : memref<1x4x4x32xf32, #tpu.memory_space<vmem>>, vector<1x4x4x32xf32>,
    return
  }
  func.func @transform_0(%arg0: i32, %arg1: i32) -> (i32, i32, i32, i32, i32) {
    %c0_i32 = arith.constant 0 : i32
    %c0_i32_0 = arith.constant 0 : i32
    %c0_i32_1 = arith.constant 0 : i32
    %c0_i32_2 = arith.constant 0 : i32
    return %arg0, %arg1, %c0_i32, %c0_i32_0, %c0_i32_1 : i32, i32, i32, i32, i32
  }
  func.func @transform_1(%arg0: i32, %arg1: i32) -> (i32, i32, i32, i32) {
    %c0_i32 = arith.constant 0 : i32
    %c0_i32_0 = arith.constant 0 : i32
    %c0_i32_1 = arith.constant 0 : i32
    return %arg0, %arg1, %c0_i32, %c0_i32_0 : i32, i32, i32, i32
  }
  func.func @transform_2(%arg0: i32, %arg1: i32) -> (i32, i32) {
    %c0_i32 = arith.constant 0 : i32
    %c0_i32_0 = arith.constant 0 : i32
    %c0_i32_1 = arith.constant 0 : i32
    return %c0_i32, %c0_i32_0 : i32, i32
  }
  func.func @transform_3(%arg0: i32, %arg1: i32) -> (i32, i32) {
    %c0_i32 = arith.constant 0 : i32
    %c0_i32_0 = arith.constant 0 : i32
    %c0_i32_1 = arith.constant 0 : i32
    return %c0_i32, %c0_i32_0 : i32, i32
  }
  func.func @transform_4(%arg0: i32, %arg1: i32) -> (i32, i32) {
    %c0_i32 = arith.constant 0 : i32
    %c0_i32_0 = arith.constant 0 : i32
    %c0_i32_1 = arith.constant 0 : i32
    return %c0_i32, %c0_i32_0 : i32, i32
  }
  func.func @transform_5(%arg0: i32, %arg1: i32) -> (i32, i32, i32, i32) {
    %c0_i32 = arith.constant 0 : i32
    %c0_i32_0 = arith.constant 0 : i32
    %c0_i32_1 = arith.constant 0 : i32
    return %arg0, %arg1, %c0_i32, %c0_i32_0 : i32, i32, i32, i32
  }
}

</mosaic_0001>

<bundles_post_ra>
// kernel: mul.55
= control target key start
LH: loop header
LB: loop body
LE: loop exit
PB: predicated region body
PF: predicated region fallthrough
CT: control target
= control target key end

     0   :  { %vm47_vm0 = vcmask 261120   ;;  %s185_s0 = inlined_call_operand.vmem [shape: f32[3,3,4,32], index: 0, kind: input, shape index: {}]   ;;  %s186_s1 = inlined_call_operand.vmem [shape: f32[36,32], index: 1, kind: output, shape index: {}]  }
   0x1   :  { %v96_v0 = vld [vmem:[%s185_s0 + $0x20] sm:$0xf]  ;;  %v97_v1 = vld [vmem:[%s185_s0 + $0x1c] sm:$0xf]  ;;  %v98_v2 = vld [vmem:[%s185_s0 + $0x18] sm:$0xf] }
   0x2   :  { %9 = vst [vmem:[#allocation0 + $0x10] sm:$0xf] %v96_v0  ;;  %14 = vst [vmem:[#allocation0 + $0x40] sm:$0xf] %v97_v1  ;;  %v99_v3 = vld [vmem:[%s185_s0 + $0x14] sm:$0xf] }
   0x3   :  { %19 = vst [vmem:[#allocation0 + $0x28] sm:$0xf] %v98_v2  ;;  %v100_v4 = vld [vmem:[%s185_s0 + $0x10] sm:$0xf]  ;;  %v101_v5 = vld [vmem:[%s185_s0 + $0xc] sm:$0xf] }
   0x4   :  { %24 = vst [vmem:[#allocation0 + $0x30] sm:$0xf] %v99_v3  ;;  %29 = vst [vmem:[#allocation0 + $0x20] sm:$0xf] %v100_v4  ;;  %v102_v6 = vld [vmem:[%s185_s0 + $0x8] sm:$0xf] }
   0x5   :  { %34 = vst [vmem:[#allocation0 + $0x18] sm:$0xf] %v101_v5  ;;  %v103_v7 = vld [vmem:[%s185_s0 + $0x4] sm:$0xf]  ;;  %v44_v8 = vld [vmem:[%s185_s0] sm:$0xf] }
   0x6   :  { %39 = vst [vmem:[#allocation0] sm:$0xf] %v102_v6  ;;  %43 = vst [vmem:[#allocation0 + $0x8] sm:$0xf] %v103_v7 }
   0x7   :  { %45 = vst [vmem:[#allocation0 + $0x38] sm:$0xf] %v44_v8 }
   0x9   :  { %v80_v10 = vld [vmem:[#allocation0 + $0x40] sm:$0xf]   ;;  %v85_v11 = vld [vmem:[#allocation0 + $0x10] sm:$0xf]  }
   0xa   :  { %v75_v9 = vld [vmem:[#allocation0 + $0x28] sm:$0xf]   ;;  %110 = vst.msk [vmem:[%s186_s1 + $0x1c] sm:$0xf] %vm47_vm0, %v80_v10   ;;  %111 = vst.msk [vmem:[%s186_s1 + $0x20] sm:$0xf] %vm47_vm0, %v85_v11  }
   0xb   :  { %v65_v13 = vld [vmem:[#allocation0 + $0x20] sm:$0xf]   ;;  %v70_v14 = vld [vmem:[#allocation0 + $0x30] sm:$0xf]   ;;  %109 = vst.msk [vmem:[%s186_s1 + $0x18] sm:$0xf] %vm47_vm0, %v75_v9  }
   0xc   :  { %v60_v12 = vld [vmem:[#allocation0 + $0x18] sm:$0xf]   ;;  %107 = vst.msk [vmem:[%s186_s1 + $0x10] sm:$0xf] %vm47_vm0, %v65_v13   ;;  %108 = vst.msk [vmem:[%s186_s1 + $0x14] sm:$0xf] %vm47_vm0, %v70_v14  }
   0xd   :  { %v50_v16 = vld [vmem:[#allocation0 + $0x8] sm:$0xf]   ;;  %v55_v17 = vld [vmem:[#allocation0] sm:$0xf]   ;;  %106 = vst.msk [vmem:[%s186_s1 + $0xc] sm:$0xf] %vm47_vm0, %v60_v12  }
   0xe   :  { %v46_v15 = vld [vmem:[#allocation0 + $0x38] sm:$0xf]   ;;  %104 = vst.msk [vmem:[%s186_s1 + $0x4] sm:$0xf] %vm47_vm0, %v50_v16   ;;  %105 = vst.msk [vmem:[%s186_s1 + $0x8] sm:$0xf] %vm47_vm0, %v55_v17  }
   0xf   :  { %48 = vst.msk [vmem:[%s186_s1] sm:$0xf] %vm47_vm0, %v46_v15  }

// kernel: tile.18
= control target key start
LH: loop header
LB: loop body
LE: loop exit
PB: predicated region body
PF: predicated region fallthrough
CT: control target
= control target key end

     0   :  { %s22_s0 = inlined_call_operand.vmem [shape: f32[32], index: 0, kind: input, shape index: {}]   ;;  %s23_s1 = inlined_call_operand.vmem [shape: f32[4,32], index: 1, kind: output, shape index: {}]  }
   0x1   :  { %v4_v0 = vld [vmem:[%s22_s0] ss:$0 sm:$0xff] }
   0x2   :  { %5 = vst [vmem:[%s23_s1] sm:$0xf] %v4_v0 }

// kernel: tile.19
= control target key start
LH: loop header
LB: loop body
LE: loop exit
PB: predicated region body
PF: predicated region fallthrough
CT: control target
= control target key end

     0   :  { %vm8_vm0 = vcmask 261120   ;;  %s40_s8 = smov 32   ;;  %s41_s9 = smov 64   ;;  %vm14_vm1 = vcmask 1048320   ;;  %vm20_vm2 = vcmask 785920   ;;  %vm26_vm3 = vcmask 523520   ;;  %s58_s0 = inlined_call_operand.vmem [shape: f32[4,32], index: 0, kind: input, shape index: {}]   ;;  %s59_s1 = inlined_call_operand.vmem [shape: f32[1,128], index: 1, kind: output, shape index: {}]  }
   0x1   :  { %v5_v0 = vld [vmem:[%s58_s0] sm:$0xf]  ;;  %s39_s0 = smov 96  }
   0x2   :  { %6 = vst [vmem:[#allocation1] sm:$0xf] %v5_v0 }
   0x9   :  { %v11_v1 = vld [vmem:[#allocation1 + $0x3] sm:$0x1]   ;;  %v23_v2 = vld [vmem:[#allocation1 + $0x1] sm:$0x1]   ;;  %v7_v3 = vld [vmem:[#allocation1] sm:$0x1]  }
   0xa   :  { %12 = vrot.lane.b32.xlu0 %v11_v1, %s39_s0  ;;  %24 = vrot.lane.b32.xlu1 %v23_v2, %s40_s8  ;;  %v17_v4 = vld [vmem:[#allocation1 + $0x2] sm:$0x1]   ;;  %9 = vst.msk [vmem:[#allocation0] sm:$0x1] %vm8_vm0, %v7_v3  }
   0xe   :  { %18 = vrot.lane.b32.xlu0 %v17_v4, %s41_s9 }
  0x7c   :  { %v13_v5 = vpop.permute.xlu0 %12   ;;  %v25_v6 = vpop.permute.xlu1 %24  }
  0x7d   :  { %15 = vst.msk [vmem:[#allocation0] sm:$0x1] %vm14_vm1, %v13_v5  }
  0x80   :  { %v19_v7 = vpop.permute.xlu0 %18  }
  0x81   :  { %21 = vst.msk [vmem:[#allocation0] sm:$0x1] %vm20_vm2, %v19_v7  }
  0x82   :  { %27 = vst.msk [vmem:[#allocation0] sm:$0x1] %vm26_vm3, %v25_v6  }
  0x89   :  { %v32_v8 = vld [vmem:[#allocation0] sm:$0x1] }
  0x8a   :  { %35 = vst [vmem:[%s59_s1] sm:$0x1] %v32_v8 }

// kernel: tile.23
= control target key start
LH: loop header
LB: loop body
LE: loop exit
PB: predicated region body
PF: predicated region fallthrough
CT: control target
= control target key end

     0   :  { %s22_s0 = inlined_call_operand.vmem [shape: f32[16], index: 0, kind: input, shape index: {}]   ;;  %s23_s1 = inlined_call_operand.vmem [shape: f32[8,16], index: 1, kind: output, shape index: {}]  }
   0x1   :  { %v4_v0 = vld [vmem:[%s22_s0] ss:$0 sm:$0xff] }
   0x2   :  { %5 = vst [vmem:[%s23_s1] sm:$0xff] %v4_v0 }

// kernel: tile.24
= control target key start
LH: loop header
LB: loop body
LE: loop exit
PB: predicated region body
PF: predicated region fallthrough
CT: control target
= control target key end

     0   :  { %s69_s10 = smov 112   ;;  %s70_s11 = smov 80   ;;  %vm3_vm0 = vcmask 130048   ;;  %vm9_vm1 = vcmask 1048448   ;;  %vm15_vm2 = vcmask 917248   ;;  %vm21_vm3 = vcmask 786048   ;;  %s113_s0 = inlined_call_operand.vmem [shape: f32[8,16], index: 0, kind: input, shape index: {}]   ;;  %s114_s1 = inlined_call_operand.vmem [shape: f32[1,128], index: 1, kind: output, shape index: {}]  }
   0x1   :  { %v55_v0 = vld [vmem:[%s113_s0 + $0x7] sm:$0x1]   ;;  %v57_v1 = vld [vmem:[%s113_s0 + $0x5] sm:$0x1]   ;;  %v56_v2 = vld [vmem:[%s113_s0 + $0x6] sm:$0x1]  }
   0x2   :  { %7 = vrot.lane.b32.xlu0 %v55_v0, %s69_s10  ;;  %19 = vrot.lane.b32.xlu1 %v57_v1, %s70_s11  ;;  %v58_v3 = vld [vmem:[%s113_s0 + $0x4] sm:$0x1]   ;;  %v2_v4 = vld [vmem:[%s113_s0] sm:$0x1]   ;;  %s71_s18 = smov 96   ;;  %s72_s19 = smov 64  }
   0x3   :  { %4 = vst.msk [vmem:[#allocation0] sm:$0x1] %vm3_vm0, %v2_v4   ;;  %v59_v5 = vld [vmem:[%s113_s0 + $0x3] sm:$0x1]   ;;  %v60_v6 = vld [vmem:[%s113_s0 + $0x2] sm:$0x1]  }
   0x4   :  { %s73_s24 = smov 48   ;;  %s74_s25 = smov 32   ;;  %v61_v7 = vld [vmem:[%s113_s0 + $0x1] sm:$0x1]   ;;  %vm27_vm4 = vcmask 654848   ;;  %vm33_vm5 = vcmask 523648  }
   0x5   :  { %s75_s0 = smov 16   ;;  %vm39_vm6 = vcmask 392448   ;;  %vm45_vm7 = vcmask 261248  }
   0x6   :  { %13 = vrot.lane.b32.xlu0 %v56_v2, %s71_s18  ;;  %25 = vrot.lane.b32.xlu1 %v58_v3, %s72_s19 }
   0xa   :  { %31 = vrot.lane.b32.xlu0 %v59_v5, %s73_s24  ;;  %37 = vrot.lane.b32.xlu1 %v60_v6, %s74_s25 }
   0xe   :  { %43 = vrot.lane.b32.xlu0 %v61_v7, %s75_s0 }
  0x74   :  { %v8_v8 = vpop.permute.xlu0 %7   ;;  %v20_v9 = vpop.permute.xlu1 %19  }
  0x75   :  { %10 = vst.msk [vmem:[#allocation0] sm:$0x1] %vm9_vm1, %v8_v8  }
  0x78   :  { %v14_v10 = vpop.permute.xlu0 %13   ;;  %v26_v11 = vpop.permute.xlu1 %25  }
  0x79   :  { %16 = vst.msk [vmem:[#allocation0] sm:$0x1] %vm15_vm2, %v14_v10  }
  0x7a   :  { %22 = vst.msk [vmem:[#allocation0] sm:$0x1] %vm21_vm3, %v20_v9  }
  0x7b   :  { %28 = vst.msk [vmem:[#allocation0] sm:$0x1] %vm27_vm4, %v26_v11  }
  0x7c   :  { %v32_v12 = vpop.permute.xlu0 %31   ;;  %v38_v13 = vpop.permute.xlu1 %37  }
  0x7d   :  { %34 = vst.msk [vmem:[#allocation0] sm:$0x1] %vm33_vm5, %v32_v12  }
  0x7e   :  { %40 = vst.msk [vmem:[#allocation0] sm:$0x1] %vm39_vm6, %v38_v13  }
  0x80   :  { %v44_v14 = vpop.permute.xlu0 %43  }
  0x81   :  { %46 = vst.msk [vmem:[#allocation0] sm:$0x1] %vm45_vm7, %v44_v14  }
  0x88   :  { %v51_v15 = vld [vmem:[#allocation0] sm:$0x1] }
  0x89   :  { %54 = vst [vmem:[%s114_s1] sm:$0x1] %v51_v15 }

// kernel: stem_block_forward.4
= control target key start
LH: loop header
LB: loop body
LE: loop exit
PB: predicated region body
PF: predicated region fallthrough
CT: control target
= control target key end

     0   :  { %v269_v0 = vmov 0   ;;  %vm116_vm0 = vcmask 130048   ;;  %s338_s1 = inlined_call_operand.vmem [shape: bf16[144,128], index: 1, kind: input, shape index: {}]   ;;  %s339_s0 = inlined_call_operand.vmem [shape: bf16[32,144], index: 0, kind: input, shape index: {}]   ;;  %s340_s2 = inlined_call_operand.vmem [shape: f32[1,128], index: 2, kind: input, shape index: {}]   ;;  %s341_s3 = inlined_call_operand.vmem [shape: bf16[32,128], index: 3, kind: output, shape index: {}]  }
   0x1   :  { %123 = vmatprep.subr.bf16.mxu0 %v269_v0  ;;  %235 = vmatprep.subr.bf16.mxu1 %v269_v0  ;;  %v254_v1 = vld [vmem:[%s338_s1 + $0x38] sm:$0xff]   ;;  %v255_v2 = vld [vmem:[%s338_s1 + $0x30] sm:$0xff]   ;;  %v256_v3 = vld [vmem:[%s338_s1 + $0x28] sm:$0xff]  }
   0x2   :  { %124 = vmatpush1.bf16.msra.mxu0 %v254_v1  ;;  %244 = vmatpush1.bf16.msra.mxu1 %v254_v1  ;;  %v257_v4 = vld [vmem:[%s338_s1 + $0x20] sm:$0xff]   ;;  %v268_v6 = vld [vmem:[%s339_s0 + $0x14] ss:$8 sps:$4 sm:$0xff]   ;;  %v260_v9 = vld [vmem:[%s338_s1 + $0x8] sm:$0xff]  }
   0x3   :  { %125 = vmatprep.subr.bf16.mxu0 %v269_v0  ;;  %236 = vmatprep.subr.bf16.mxu1 %v269_v0  ;;  %v265_v5 = vld [vmem:[%s339_s0 + $0x4] ss:$8 sps:$4 sm:$0xff]   ;;  %v258_v7 = vld [vmem:[%s338_s1 + $0x18] sm:$0xff]   ;;  %v259_v8 = vld [vmem:[%s338_s1 + $0x10] sm:$0xff]  }
   0x4   :  { %214 = vmatprep.mubr.msk.bf16.mxu0 %vm116_vm0, %v265_v5  ;;  %215 = vmatprep.mubr.msk.bf16.mxu1 %vm116_vm0, %v268_v6  ;;  %v261_v10 = vld [vmem:[%s338_s1] sm:$0xff]   ;;  %v266_v13 = vld [vmem:[%s339_s0 + $0x10] ss:$8 sps:$4 sm:$0xff]  }
   0x5   :  { %v262_v11 = vld [vmem:[%s338_s1 + $0x40] sm:$0xff]  }
   0x6   :  { %126 = vmatpush1.bf16.msra.mxu0 %v255_v2  ;;  %245 = vmatpush1.bf16.msra.mxu1 %v255_v2  ;;  %v263_v12 = vld [vmem:[%s339_s0] ss:$8 sps:$4 sm:$0xff]  }
   0x7   :  { %127 = vmatprep.subr.bf16.mxu0 %v269_v0  ;;  %237 = vmatprep.subr.bf16.mxu1 %v269_v0  ;;  %v200_v14 = vld [vmem:[%s340_s2] ss:$0 sm:$0xff] }
   0xa   :  { %128 = vmatpush1.bf16.msra.mxu0 %v256_v3  ;;  %246 = vmatpush1.bf16.msra.mxu1 %v256_v3 }
   0xb   :  { %129 = vmatprep.subr.bf16.mxu0 %v269_v0  ;;  %238 = vmatprep.subr.bf16.mxu1 %v269_v0 }
   0xe   :  { %130 = vmatpush1.bf16.msra.mxu0 %v257_v4  ;;  %247 = vmatpush1.bf16.msra.mxu1 %v257_v4 }
   0xf   :  { %131 = vmatprep.subr.bf16.mxu0 %v269_v0  ;;  %239 = vmatprep.subr.bf16.mxu1 %v269_v0 }
  0x12   :  { %132 = vmatpush1.bf16.msra.mxu0 %v258_v7  ;;  %248 = vmatpush1.bf16.msra.mxu1 %v258_v7 }
  0x13   :  { %133 = vmatprep.subr.bf16.mxu0 %v269_v0  ;;  %240 = vmatprep.subr.bf16.mxu1 %v269_v0 }
  0x16   :  { %134 = vmatpush1.bf16.msra.mxu0 %v259_v8  ;;  %249 = vmatpush1.bf16.msra.mxu1 %v259_v8 }
  0x17   :  { %135 = vmatprep.subr.bf16.mxu0 %v269_v0  ;;  %241 = vmatprep.subr.bf16.mxu1 %v269_v0 }
  0x1a   :  { %136 = vmatpush1.bf16.msra.mxu0 %v260_v9  ;;  %250 = vmatpush1.bf16.msra.mxu1 %v260_v9 }
  0x1b   :  { %137 = vmatprep.subr.bf16.mxu0 %v269_v0  ;;  %242 = vmatprep.subr.bf16.mxu1 %v269_v0 }
  0x1e   :  { %138 = vmatpush1.bf16.msra.mxu0 %v261_v10  ;;  %251 = vmatpush1.bf16.msra.mxu1 %v261_v10 }
  0x1f   :  { %153 = vmatprep.subr.bf16.mxu0 %v269_v0  ;;  %243 = vmatprep.subr.bf16.mxu1 %v269_v0 }
  0x22   :  { %154 = vmatpush2.bf16.msra.mxu0 %v262_v11  ;;  %252 = vmatpush2.bf16.msra.mxu1 %v262_v11 }
  0x25   :  { %156 = vmatmul.mubr.bf16.vlgmr.msra.gmra.mxu0 %v263_v12  ;;  %164 = vmatmul.mubr.bf16.vlgmr.msra.gmra.mxu1 %v266_v13 }
  0xe5   :  { %v157_v15 = vpop.f32.mrf.mxu0  ;;  %v165_v16 = vpop.f32.mrf.mxu1 }
  0xe6   :  { %v158_v19 = vadd.f32 %v200_v14, %v157_v15  ;;  %v166_v20 = vadd.f32 %v200_v14, %v165_v16 }
  0xe7   :  { %v159_v17 = vpop.f32.mrf.mxu0  ;;  %v167_v18 = vpop.f32.mrf.mxu1 }
  0xe8   :  { %v172_v27 = vmax.f32 %v158_v19, 0.0  ;;  %v174_v28 = vmax.f32 %v166_v20, 0.0 }
  0xe9   :  { %v160_v21 = vpop.f32.mrf.mxu0  ;;  %v168_v22 = vpop.f32.mrf.mxu1 }
  0xea   :  { %v161_v23 = vadd.f32 %v200_v14, %v160_v21  ;;  %v169_v24 = vadd.f32 %v200_v14, %v168_v22 }
  0xeb   :  { %v162_v25 = vpop.f32.mrf.mxu0  ;;  %v170_v26 = vpop.f32.mrf.mxu1 }
  0xec   :  { %v173_v29 = vmax.f32 %v161_v23, 0.0  ;;  %v175_v30 = vmax.f32 %v169_v24, 0.0 }
  0xee   :  { %v227_v31 = vpack.c.bf16 %v173_v29, %v172_v27  ;;  %v232_v32 = vpack.c.bf16 %v175_v30, %v174_v28 }
  0xf0   :  { %228 = vst [vmem:[%s341_s3] sm:$0xff] %v227_v31   ;;  %234 = vst [vmem:[%s341_s3 + $0x8] sm:$0xff] %v232_v32  }

// kernel: stem_block_forward.5
= control target key start
LH: loop header
LB: loop body
LE: loop exit
PB: predicated region body
PF: predicated region fallthrough
CT: control target
= control target key end

     0   :  { %s368_s1 = inlined_call_operand.vmem [shape: bf16[256,128], index: 1, kind: input, shape index: {}]   ;;  %s369_s0 = inlined_call_operand.vmem [shape: bf16[16,256], index: 0, kind: input, shape index: {}]   ;;  %s370_s2 = inlined_call_operand.vmem [shape: f32[1,128], index: 2, kind: input, shape index: {}]   ;;  %s371_s3 = inlined_call_operand.vmem [shape: bf16[16,128], index: 3, kind: output, shape index: {}]  }
   0x1   :  { %v269_v0 = vld [vmem:[%s368_s1 + $0x78] sm:$0xff]   ;;  %v271_v2 = vld [vmem:[%s368_s1 + $0x70] sm:$0xff]   ;;  %v273_v4 = vld [vmem:[%s368_s1 + $0x68] sm:$0xff]  }
   0x2   :  { %v270_v1 = vld [vmem:[%s368_s1 + $0x38] sm:$0xff]   ;;  %247 = vmatprep.subr.bf16.mxu0 %v269_v0  ;;  %v272_v3 = vld [vmem:[%s368_s1 + $0x30] sm:$0xff]   ;;  %v274_v5 = vld [vmem:[%s368_s1 + $0x28] sm:$0xff]  }
   0x3   :  { %248 = vmatpush3.bf16.msra.mxu0 %v270_v1  ;;  %v275_v6 = vld [vmem:[%s368_s1 + $0x60] sm:$0xff]   ;;  %v277_v8 = vld [vmem:[%s368_s1 + $0x58] sm:$0xff]   ;;  %v279_v10 = vld [vmem:[%s368_s1 + $0x50] sm:$0xff]  }
   0x4   :  { %249 = vmatprep.subr.bf16.mxu0 %v271_v2  ;;  %v276_v7 = vld [vmem:[%s368_s1 + $0x20] sm:$0xff]   ;;  %v278_v9 = vld [vmem:[%s368_s1 + $0x18] sm:$0xff]   ;;  %v280_v12 = vld [vmem:[%s368_s1 + $0x10] sm:$0xff]  }
   0x5   :  { %v287_v11 = vld [vmem:[%s369_s0 + $0x4] ss:$8 sps:$4 sm:$0xff]   ;;  %v285_v17 = vld [vmem:[%s369_s0] ss:$8 sps:$4 sm:$0xff]  }
   0x6   :  { %194 = vmatprep.mubr.bf16.mxu0 %v287_v11  ;;  %v281_v13 = vld [vmem:[%s368_s1 + $0x48] sm:$0xff]   ;;  %v283_v15 = vld [vmem:[%s368_s1 + $0x40] sm:$0xff]  }
   0x7   :  { %250 = vmatpush3.bf16.msra.mxu0 %v272_v3  ;;  %v282_v14 = vld [vmem:[%s368_s1 + $0x8] sm:$0xff]   ;;  %v284_v16 = vld [vmem:[%s368_s1] sm:$0xff]  }
   0x8   :  { %251 = vmatprep.subr.bf16.mxu0 %v273_v4  ;;  %v219_v21 = vld [vmem:[%s370_s2] ss:$0 sm:$0xff] }
   0xb   :  { %252 = vmatpush3.bf16.msra.mxu0 %v274_v5 }
   0xc   :  { %253 = vmatprep.subr.bf16.mxu0 %v275_v6 }
   0xf   :  { %254 = vmatpush3.bf16.msra.mxu0 %v276_v7 }
  0x10   :  { %255 = vmatprep.subr.bf16.mxu0 %v277_v8 }
  0x13   :  { %256 = vmatpush3.bf16.msra.mxu0 %v278_v9 }
  0x14   :  { %257 = vmatprep.subr.bf16.mxu0 %v279_v10 }
  0x17   :  { %258 = vmatpush3.bf16.msra.mxu0 %v280_v12 }
  0x18   :  { %259 = vmatprep.subr.bf16.mxu0 %v281_v13 }
  0x1b   :  { %260 = vmatpush3.bf16.msra.mxu0 %v282_v14 }
  0x1c   :  { %261 = vmatprep.subr.bf16.mxu0 %v283_v15 }
  0x1f   :  { %262 = vmatpush3.bf16.msra.mxu0 %v284_v16 }
  0x22   :  { %195 = vmatmul.mubr.bf16.vlgmr.msra.gmra.mxu0 %v285_v17 }
  0xe2   :  { %v263_v18 = vpop.f32.mrf.mxu0 }
  0xe4   :  { %v264_v19 = vpop.f32.mrf.mxu0 }
  0xe5   :  { %v265_v20 = vadd.f32 %v264_v19, %v263_v18 }
  0xe6   :  { %v266_v22 = vpop.f32.mrf.mxu0 }
  0xe7   :  { %v197_v24 = vadd.f32 %v265_v20, %v219_v21 }
  0xe8   :  { %v267_v23 = vpop.f32.mrf.mxu0 }
  0xe9   :  { %v268_v25 = vadd.f32 %v267_v23, %v266_v22  ;;  %v203_v27 = vmax.f32 %v197_v24, 0.0 }
  0xeb   :  { %v200_v26 = vadd.f32 %v268_v25, %v219_v21 }
  0xed   :  { %v204_v28 = vmax.f32 %v200_v26, 0.0 }
  0xef   :  { %v245_v29 = vpack.c.bf16 %v204_v28, %v203_v27 }
  0xf1   :  { %246 = vst [vmem:[%s371_s3] sm:$0xff] %v245_v29  }

// kernel: stem_block_forward.6
= control target key start
LH: loop header
LB: loop body
LE: loop exit
PB: predicated region body
PF: predicated region fallthrough
CT: control target
= control target key end

     0   :  { %v608_v35 = vmov 0.0   ;;  %vm609_vm0 = vmmov 0   ;;  %vm330_vm1 = vcmask 523264   ;;  %s753_s1 = inlined_call_operand.vmem [shape: bf16[576,128], index: 1, kind: input, shape index: {}]   ;;  %s754_s0 = inlined_call_operand.vmem [shape: bf16[8,576], index: 0, kind: input, shape index: {}]   ;;  %s755_s2 = inlined_call_operand.vmem [shape: f32[1,128], index: 2, kind: input, shape index: {}]   ;;  %s756_s3 = inlined_call_operand.vmem [shape: bf16[8,128], index: 3, kind: output, shape index: {}]  }
   0x1   :  { %v567_v0 = vld [vmem:[%s753_s1 + $0x78] sm:$0xff]   ;;  %v571_v4 = vld [vmem:[%s753_s1 + $0x70] sm:$0xff]   ;;  %v575_v8 = vld [vmem:[%s753_s1 + $0x68] sm:$0xff]  }
   0x2   :  { %v568_v1 = vld [vmem:[%s753_s1 + $0x38] sm:$0xff]   ;;  %504 = vmatprep.subr.bf16.mxu0 %v567_v0  ;;  %v572_v5 = vld [vmem:[%s753_s1 + $0x30] sm:$0xff]   ;;  %v576_v9 = vld [vmem:[%s753_s1 + $0x28] sm:$0xff]  }
   0x3   :  { %v569_v2 = vld [vmem:[%s753_s1 + $0xf8] sm:$0xff]   ;;  %505 = vmatpush3.bf16.msra.mxu0 %v568_v1  ;;  %v573_v6 = vld [vmem:[%s753_s1 + $0xf0] sm:$0xff]   ;;  %v577_v10 = vld [vmem:[%s753_s1 + $0xe8] sm:$0xff]  }
   0x4   :  { %v570_v3 = vld [vmem:[%s753_s1 + $0xb8] sm:$0xff]   ;;  %526 = vmatprep.subr.bf16.mxu1 %v569_v2  ;;  %506 = vmatprep.subr.bf16.mxu0 %v571_v4  ;;  %v574_v7 = vld [vmem:[%s753_s1 + $0xb0] sm:$0xff]   ;;  %v578_v11 = vld [vmem:[%s753_s1 + $0xa8] sm:$0xff]  }
   0x5   :  { %527 = vmatpush3.bf16.msra.mxu1 %v570_v3  ;;  %v579_v12 = vld [vmem:[%s753_s1 + $0x60] sm:$0xff]   ;;  %v583_v16 = vld [vmem:[%s753_s1 + $0x58] sm:$0xff]   ;;  %v587_v20 = vld [vmem:[%s753_s1 + $0x50] sm:$0xff]  }
   0x6   :  { %528 = vmatprep.subr.bf16.mxu1 %v573_v6  ;;  %v580_v13 = vld [vmem:[%s753_s1 + $0x20] sm:$0xff]   ;;  %v584_v17 = vld [vmem:[%s753_s1 + $0x18] sm:$0xff]   ;;  %v588_v21 = vld [vmem:[%s753_s1 + $0x10] sm:$0xff]  }
   0x7   :  { %507 = vmatpush3.bf16.msra.mxu0 %v572_v5  ;;  %v581_v14 = vld [vmem:[%s753_s1 + $0xe0] sm:$0xff]   ;;  %v585_v18 = vld [vmem:[%s753_s1 + $0xd8] sm:$0xff]   ;;  %v589_v22 = vld [vmem:[%s753_s1 + $0xd0] sm:$0xff]  }
   0x8   :  { %508 = vmatprep.subr.bf16.mxu0 %v575_v8  ;;  %v582_v15 = vld [vmem:[%s753_s1 + $0xa0] sm:$0xff]   ;;  %v586_v19 = vld [vmem:[%s753_s1 + $0x98] sm:$0xff]   ;;  %v590_v23 = vld [vmem:[%s753_s1 + $0x90] sm:$0xff]  }
   0x9   :  { %529 = vmatpush3.bf16.msra.mxu1 %v574_v7  ;;  %v591_v24 = vld [vmem:[%s753_s1 + $0x48] sm:$0xff]   ;;  %v595_v28 = vld [vmem:[%s753_s1 + $0x40] sm:$0xff]   ;;  %v604_v39 = vld [vmem:[%s753_s1 + $0x118] sm:$0xff]  }
   0xa   :  { %530 = vmatprep.subr.bf16.mxu1 %v577_v10  ;;  %v592_v25 = vld [vmem:[%s753_s1 + $0x8] sm:$0xff]   ;;  %v596_v29 = vld [vmem:[%s753_s1] sm:$0xff]   ;;  %v605_v40 = vld [vmem:[%s753_s1 + $0x110] sm:$0xff]  }
   0xb   :  { %509 = vmatpush3.bf16.msra.mxu0 %v576_v9  ;;  %v593_v26 = vld [vmem:[%s753_s1 + $0xc8] sm:$0xff]   ;;  %v597_v30 = vld [vmem:[%s753_s1 + $0xc0] sm:$0xff]   ;;  %v600_v43 = vld [vmem:[%s754_s0 + $0x10] ss:$0 sps:$4 sm:$0xff]  }
   0xc   :  { %510 = vmatprep.subr.bf16.mxu0 %v579_v12  ;;  %v594_v27 = vld [vmem:[%s753_s1 + $0x88] sm:$0xff]   ;;  %v15_v31 = vld [vmem:[%s754_s0] sm:$0xff] }
   0xd   :  { %531 = vmatpush3.bf16.msra.mxu1 %v578_v11  ;;  %v462_v32 = vcombine.low %v15_v31, %v15_v31  ;;  %v463_v33 = vcombine.high %v15_v31, %v15_v31  ;;  %v601_v34 = vld [vmem:[%s753_s1 + $0x80] sm:$0xff]   ;;  %v16_v36 = vld [vmem:[%s754_s0 + $0x8] sm:$0xff] }
   0xe   :  { %532 = vmatprep.subr.bf16.mxu1 %v581_v14  ;;  %v464_v37 = vcombine.low %v16_v36, %v16_v36  ;;  %v465_v38 = vcombine.high %v16_v36, %v16_v36  ;;  %v606_v41 = vld [vmem:[%s753_s1 + $0x108] sm:$0xff]   ;;  %v607_v42 = vld [vmem:[%s753_s1 + $0x100] sm:$0xff]  }
   0xf   :  { %511 = vmatpush3.bf16.msra.mxu0 %v580_v13  ;;  %366 = vmatprep.mubr.bf16.mxu0 %v463_v33  ;;  %v461_v52 = vld [vmem:[%s755_s2] ss:$0 sm:$0xff] }
  0x10   :  { %512 = vmatprep.subr.bf16.mxu0 %v583_v16  ;;  %406 = vmatprep.mubr.bf16.mxu1 %v465_v38 }
  0x11   :  { %533 = vmatpush3.bf16.msra.mxu1 %v582_v15 }
  0x12   :  { %534 = vmatprep.subr.bf16.mxu1 %v585_v18 }
  0x13   :  { %513 = vmatpush3.bf16.msra.mxu0 %v584_v17 }
  0x14   :  { %514 = vmatprep.subr.bf16.mxu0 %v587_v20 }
  0x15   :  { %535 = vmatpush3.bf16.msra.mxu1 %v586_v19 }
  0x16   :  { %536 = vmatprep.subr.bf16.mxu1 %v589_v22 }
  0x17   :  { %515 = vmatpush3.bf16.msra.mxu0 %v588_v21 }
  0x18   :  { %516 = vmatprep.subr.bf16.mxu0 %v591_v24 }
  0x19   :  { %537 = vmatpush3.bf16.msra.mxu1 %v590_v23 }
  0x1a   :  { %538 = vmatprep.subr.bf16.mxu1 %v593_v26 }
  0x1b   :  { %517 = vmatpush3.bf16.msra.mxu0 %v592_v25 }
  0x1c   :  { %518 = vmatprep.subr.bf16.mxu0 %v595_v28 }
  0x1d   :  { %539 = vmatpush3.bf16.msra.mxu1 %v594_v27 }
  0x1e   :  { %540 = vmatprep.subr.bf16.mxu1 %v597_v30 }
  0x1f   :  { %519 = vmatpush3.bf16.msra.mxu0 %v596_v29 }
  0x20   :  { %553 = vmatprep.subr.bf16.mxu0 %v608_v35 }
  0x21   :  { %541 = vmatpush3.bf16.msra.mxu1 %v601_v34 }
  0x22   :  { %367 = vmatmul.mubr.bf16.vlgmr.msra.gmra.mxu0 %v462_v32 }
  0x23   :  { %554 = vmatpush3.bf16.msra.mxu0 %v604_v39  ;;  %561 = vmatprep.mubr.msk.bf16.mxu0 %vm609_vm0, %v608_v35 }
  0x24   :  { %407 = vmatmul.mubr.bf16.vlgmr.msra.gmra.mxu1 %v464_v37  ;;  %555 = vmatprep.subr.bf16.mxu0 %v608_v35 }
  0x27   :  { %556 = vmatpush3.bf16.msra.mxu0 %v605_v40 }
  0x28   :  { %557 = vmatprep.subr.bf16.mxu0 %v608_v35 }
  0x2b   :  { %558 = vmatpush3.bf16.msra.mxu0 %v606_v41 }
  0x2c   :  { %559 = vmatprep.subr.bf16.mxu0 %v608_v35 }
  0x2f   :  { %560 = vmatpush3.bf16.msra.mxu0 %v607_v42 }
  0x32   :  { %562 = vmatmul.mubr.msk.bf16.vlgmr.msra.gmra.mxu0 %vm330_vm1, %v600_v43 }
  0xe2   :  { %v520_v44 = vpop.f32.mrf.mxu0 }
  0xe4   :  { %v521_v45 = vpop.f32.mrf.mxu0  ;;  %v542_v46 = vpop.f32.mrf.mxu1 }
  0xe5   :  { %v522_v51 = vadd.f32 %v521_v45, %v520_v44 }
  0xe6   :  { %v523_v47 = vpop.f32.mrf.mxu0  ;;  %v543_v48 = vpop.f32.mrf.mxu1 }
  0xe7   :  { %v369_v54 = vadd.f32 %v522_v51, %v461_v52  ;;  %v544_v55 = vadd.f32 %v543_v48, %v542_v46 }
  0xe8   :  { %v524_v49 = vpop.f32.mrf.mxu0  ;;  %v545_v50 = vpop.f32.mrf.mxu1 }
  0xe9   :  { %v409_v56 = vadd.f32 %v544_v55, %v369_v54 }
  0xea   :  { %v546_v53 = vpop.f32.mrf.mxu1 }
  0xf2   :  { %v448_v57 = vpop.f32.mrf.mxu0 }
  0xf3   :  { %v449_v58 = vadd.f32 %v448_v57, %v409_v56 }
  0xf4   :  { %v563_v59 = vpop.f32.mrf.mxu0 }
  0xf5   :  { %v454_v60 = vmax.f32 %v449_v58, 0.0 }
  0xf6   :  { %v451_v61 = vpop.f32.mrf.mxu0 }
  0xf7   :  { %v455_v62 = vpack.c.bf16 %v454_v60, %v454_v60 }
  0xf8   :  { %v564_v63 = vpop.f32.mrf.mxu0 }
  0xf9   :  { %456 = vst [vmem:[%s756_s3] sm:$0xf] %v455_v62 }

// kernel: stem_block_forward.7
= control target key start
LH: loop header
LB: loop body
LE: loop exit
PB: predicated region body
PF: predicated region fallthrough
CT: control target
= control target key end

     0   :  { %10 = vsyncpa [#allocation3], 0  ;;  %s996_s0 = inlined_call_operand.vmem [shape: bf16[2,4,2,4,64], index: 0, kind: input, shape index: {}]   ;;  %s997_s1 = inlined_call_operand.vmem [shape: bf16[2,4,4,32], index: 1, kind: input, shape index: {}]   ;;  %s998_s2 = inlined_call_operand.vmem [shape: bf16[32,32], index: 2, kind: input, shape index: {}]   ;;  %s999_s3 = inlined_call_operand.vmem [shape: bf16[32,32], index: 3, kind: input, shape index: {}]   ;;  %s1000_s4 = inlined_call_operand.vmem [shape: f32[1,32], index: 4, kind: input, shape index: {}]   ;;  %s1001_s5 = inlined_call_operand.hbm [shape: f32[2,4,4,32], index: 5, kind: output, shape index: {}]  }
   0x1   :  { %12 = vsyncpa [#allocation3 + $0x1], 0  ;;  %s858_s18 = smov 0   ;;  %s860_s19 = smov 0  }
   0x2   :  { %s862_s20 = smov 0   ;;  %s864_s21 = smov 0  }
   0x3   :  { %s866_s22 = smov 0   ;;  %s868_s23 = smov 0  }
   0x4 LB: > { %s631_s24 = sadd.s32 4294967295, %s819_s23   ;;  %s632_s25 = sadd.s32 4294967294, %s819_s23   ;;  %s819_s23 = sphi %s868_s23, %s18_s23   ;;  %s815_s22 = sphi %s866_s22, %s1008_s22   ;;  %s811_s21 = sphi %s864_s21, %s1007_s21   ;;  %s807_s20 = sphi %s862_s20, %s1006_s20   ;;  %s803_s19 = sphi %s860_s19, %s1005_s19   ;;  %s799_s18 = sphi %s858_s18, %s1004_s18  }
   0x5   : > { %s30_s26 = sadd.s32 1, %s815_s22  ;;  %s158_s27 = sadd.s32 1, %s807_s20 }
   0x6   : > { %p32_p0 = scmp.ge.s32.totalorder %s30_s26, 2  ;;  %p168_p1 = scmp.ne.s32.totalorder %s807_s20, %s803_s19 }
   0x7   : > { %p169_p2 = scmp.eq.s32.totalorder %s631_s24, 1  ;;  %p174_p3 = scmp.ne.s32.totalorder %s803_s19, %s799_s18 }
   0x8   : > { %s1010_s26 = smov (%p32_p0, %s30_s26), 0  ;;  %p175_p5 = scmp.eq.s32.totalorder %s632_s25, 1 }
   0x9   : > { %p898_p4 = por %p169_p2, %p168_p1  ;;  %s153_s29 = ssub.s32 %s815_s22, %s1010_s26 }
   0xa   : > { %p635_p6 = scmp.ge.s32.totalorder %s819_s23, 1  ;;  %p156_p7 = scmp.eq.s32.totalorder %s153_s29, 0 }
   0xb   : > { %p905_p8 = por %p175_p5, %p174_p3  ;;  %p229_p9 = scmp.lt.s32.totalorder %s819_s23, 3 }
   0xc   : > { %s911_s6 = scalar_select %p156_p7, %s807_s20, %s158_s27  }
   0xd   : > { %p230_p10 = pnand %p635_p6, %p229_p9 }
   0xe   : > { %p272_p11 = scmp.lt.s32.totalorder (!%p230_p10), %s811_s21, 1  ;;  %s268_s10 = sand.u32 (!%p230_p10), 1, %s803_s19  }
   0xf   : > { %233 = sbr.rel (%p230_p10) target bundleno = 375 (0x177), region = 40  ;;  %s636_s13 = sshll.u32 (!%p230_p10), %s268_s10, 4 }
  0x14   : > { %v739_v0 = vld [vmem:[%s999_s3 + $0x8] sm:$0xff]   ;;  %v347_v1 = vlaneseq  ;;  %v821_v2 = vmov 0.0   ;;  %s273_s9 = scalar_select %p272_p11, %s811_s21, 1  ;;  %v740_v3 = vld [vmem:[%s999_s3] sm:$0xff]   ;;  %v822_v4 = vmov 1983009808  }
  0x15   : > { %662 = vmatprep.subr.bf16.mxu0 %v821_v2  ;;  %670 = vmatprep.subr.bf16.mxu1 %v821_v2  ;;  %v345_v5 = vunpack.c.l.s4 %v822_v4  ;;  %vm823_vm0 = vmmov 0   ;;  %v741_v7 = vld [vmem:[%s998_s2 + $0x8] sm:$0xff]   ;;  %v742_v9 = vld [vmem:[%s998_s2] sm:$0xff]   ;;  %vm371_vm1 = vcmask 261120   ;;  %vm510_vm2 = vcmask 257024  }
  0x16   : > { %663 = vmatpush3.bf16.msra.mxu0 %v739_v0  ;;  %v348_v6 = vshrl.u32 %v347_v1, 7  ;;  %666 = vmatprep.mubr.msk.bf16.mxu0 %vm823_vm0, %v821_v2  ;;  %s653_s14 = sshll.u32 %s273_s9, 4  ;;  %s654_s15 = sshll.u32 %s273_s9, 3  ;;  %v647_v50 = vld [vmem:[%s1000_s4] ss:$0 sm:$0xff] }
  0x17   : > { %664 = vmatprep.subr.bf16.mxu0 %v821_v2  ;;  %674 = vmatprep.mubr.msk.bf16.mxu1 %vm823_vm0, %v821_v2  ;;  %s280_s24 = scalar_lea.vmem %s996_s0, %s653_s14  ;;  %v346_v8 = vunpack.c.0.s8 %v345_v5  ;;  %s290_s29 = scalar_lea.vmem %s997_s1, %s654_s15 }
  0x18   : > { %671 = vmatpush3.bf16.msra.mxu1 %v741_v7  ;;  %v298_v10 = vld [vmem:[%s280_s24 + $0x8] sm:$0x3]  ;;  %v299_v11 = vld [vmem:[%s280_s24 + $0xa] sm:$0x3]  ;;  %v294_v12 = vld [vmem:[%s280_s24] sm:$0x3] }
  0x19   : > { %672 = vmatprep.subr.bf16.mxu1 %v821_v2  ;;  %v304_v13 = vmax.bf16 %v299_v11, %v298_v10  ;;  %v295_v14 = vld [vmem:[%s280_s24 + $0x2] sm:$0x3]  ;;  %v300_v15 = vld [vmem:[%s280_s24 + $0xc] sm:$0x3]  ;;  %v301_v16 = vld [vmem:[%s280_s24 + $0xe] sm:$0x3]  ;;  %v349_v20 = vsub.s32 %v346_v8, %v348_v6 }
  0x1a   : > { %665 = vmatpush3.bf16.msra.mxu0 %v740_v3  ;;  %v302_v17 = vmax.bf16 %v295_v14, %v294_v12  ;;  %v296_v18 = vld [vmem:[%s280_s24 + $0x4] sm:$0x3]  ;;  %v297_v19 = vld [vmem:[%s280_s24 + $0x6] sm:$0x3]  ;;  %v330_v21 = vld [vmem:[%s290_s29] sm:$0x3]  ;;  %v305_v22 = vmax.bf16 %v301_v16, %v300_v15 }
  0x1b   : > { %s824_s9 = smov 96   ;;  %v331_v23 = vld [vmem:[%s290_s29 + $0x2] sm:$0x3]  ;;  %v332_v24 = vld [vmem:[%s290_s29 + $0x4] sm:$0x3]  ;;  %v303_v26 = vmax.bf16 %v297_v19, %v296_v18  ;;  %s270_s14 = scalar_lea.vmem [#allocation2], %s636_s13 }
  0x1c   : > { %314 = vrot.lane.b32.xlu1 %v304_v13, %s824_s9  ;;  %v333_v25 = vld [vmem:[%s290_s29 + $0x6] sm:$0x3]  ;;  %673 = vmatpush3.bf16.msra.mxu1 %v742_v9  ;;  %v342_v27 = vcombine.low %v330_v21, %v331_v23  ;;  %s655_s15 = sshll.u32 %s811_s21, 8  ;;  %s531_s16 = sshll.u32 %s270_s14, 4  ;;  %s947_s16 = int_to_ptr.vmem [resolvable:$true] %s531_s16 }
  0x1d   : > { %310 = vrot.lane.b32.xlu0 %v302_v17, %s824_s9  ;;  %v343_v28 = vcombine.low %v332_v24, %v333_v25  ;;  %s945_s25 = scalar_lea.hbm %s1001_s5, %s655_s15  ;;  %s951_s21 = scalar_lea.sflag [#allocation3], %s268_s10 }
  0x1e   : > { %v350_v29 = vrot.slane %v342_v27, %v349_v20  ;;  %s743_s27 = scalar_lea.vmem %s947_s16, 256  ;;  %s825_s29 = smov [#allocation2]  }
  0x1f   : > { %v357_v30 = vrot.slane %v343_v28, %v349_v20  ;;  %p744_p12 = scmp.ne.s32.totalorder %s947_s16, %s743_s27  ;;  %s747_s7 = sshll.u32 %s825_s29, 4  ;;  %s748_s7 = int_to_ptr.vmem [resolvable:$false] %s747_s7 }
  0x20   : > { %316 = vrot.lane.b32.xlu1 %v305_v22, %s824_s9  ;;  %s749_s8 = scalar_lea.vmem %s748_s7, 512  ;;  %p750_p1 = scmp.lt.s32.totalorder %s947_s16, %s748_s7 }
  0x21   : > { %312 = vrot.lane.b32.xlu0 %v303_v26, %s824_s9  ;;  %v358_v31 = vcombine.low %v350_v29, %v357_v30  ;;  %p745_p13 = pnand %p744_p12, %p898_p4  ;;  %p751_p2 = scmp.lt.s32.totalorder %s749_s8, %s743_s27 }
  0x23   : > { %667 = vmatmul.mubr.msk.bf16.vlgmr.msra.gmra.mxu0 %vm371_vm1, %v358_v31  ;;  %p746_p0 = pneg %p745_p13  ;;  %p752_p3 = por %p751_p2, %p750_p1 }
  0x25   : > { %p753_p5 = pnand %p752_p3, %p746_p0 }
  0x8e   : > { %v315_v32 = vpop.permute.xlu1 %314 }
  0x8f   : > { %v311_v33 = vpop.permute.xlu0 %310  ;;  %v324_v35 = vmax.bf16 %v315_v32, %v304_v13 }
  0x90   : > { %v322_v38 = vmax.bf16 %v311_v33, %v302_v17 }
  0x92   : > { %v317_v34 = vpop.permute.xlu1 %316 }
  0x93   : > { %v325_v36 = vmax.bf16 %v317_v34, %v305_v22  ;;  %v313_v37 = vpop.permute.xlu0 %312 }
  0x94   : > { %v323_v39 = vmax.bf16 %v313_v37, %v303_v26 }
  0x95   : > { %v421_v40 = vcombine.low %v324_v35, %v325_v36 }
  0x96   : > { %v420_v41 = vcombine.low %v322_v38, %v323_v39 }
  0x97   : > { %v435_v42 = vrot.slane %v421_v40, %v349_v20 }
  0x98   : > { %v428_v43 = vrot.slane %v420_v41, %v349_v20 }
  0x9a   : > { %v436_v44 = vcombine.low %v428_v43, %v435_v42 }
  0x9c   : > { %675 = vmatmul.mubr.msk.bf16.vlgmr.msra.gmra.mxu1 %vm371_vm1, %v436_v44 }
  0xe3   : > { %v409_v45 = vpop.f32.mrf.mxu0 }
  0xe5   : > { %v668_v46 = vpop.f32.mrf.mxu0 }
  0xe7   : > { %v412_v47 = vpop.f32.mrf.mxu0 }
  0xe9   : > { %v669_v48 = vpop.f32.mrf.mxu0 }
 0x15c   : > { %v486_v49 = vpop.f32.mrf.mxu1 }
 0x15d   : > { %v487_v51 = vadd.f32 %v486_v49, %v409_v45 }
 0x15e   : > { %v676_v52 = vpop.f32.mrf.mxu1 }
 0x15f   : > { %v500_v53 = vadd.f32 %v647_v50, %v487_v51 }
 0x160   : > { %v489_v54 = vpop.f32.mrf.mxu1 }
 0x161   : > { %v502_v55 = vmax.f32 %v500_v53, 0.0  ;;  %v490_v56 = vadd.f32 %v489_v54, %v412_v47 }
 0x162   : > { %v677_v57 = vpop.f32.mrf.mxu1 }
 0x163   : > { %v506_v58 = vcombine.high %v502_v55, %v502_v55  ;;  %511 = vst.msk [vmem:[%s270_s14] sm:$0xf] %vm510_vm2, %v502_v55  ;;  %v501_v59 = vadd.f32 %v647_v50, %v490_v56 }
 0x165   : > { %512 = vst.msk [vmem:[%s270_s14 + $0x4] sm:$0xf] %vm510_vm2, %v506_v58  ;;  %v503_v60 = vmax.f32 %v501_v59, 0.0 }
 0x167   : > { %v507_v61 = vcombine.high %v503_v60, %v503_v60  ;;  %513 = vst.msk [vmem:[%s270_s14 + $0x8] sm:$0xf] %vm510_vm2, %v503_v60 }
 0x169   : > { %514 = vst.msk [vmem:[%s270_s14 + $0xc] sm:$0xf] %vm510_vm2, %v507_v61 }
 0x16a   : > { %756 = shalt.err (!%p753_p5)
}
 0x16b   : > { %s757_s9 = scalar_lea.hbm %s945_s25, 256  ;;  %s761_s12 = scalar_lea.hbm %s1001_s5, 512 }
 0x16c   : > { %p758_p6 = scmp.ne.s32.totalorder %s945_s25, %s757_s9  ;;  %p762_p10 = scmp.lt.s32.totalorder %s945_s25, %s1001_s5 }
 0x16d   : > { %p763_p11 = scmp.lt.s32.totalorder %s761_s12, %s757_s9 }
 0x16e   : > { %p759_p7 = pnand %p758_p6, %p898_p4 }
 0x16f   : > { %p764_p12 = por %p763_p11, %p762_p10 }
 0x170   : > { %p760_p9 = pneg %p759_p7 }
 0x172   : > { %p765_p13 = pnand %p764_p12, %p760_p9 }
 0x174   : > { %768 = shalt.err (!%p765_p13)
}
 0x175   : > { %s826_s15 = smov 64   ;;  %s827_s17 = smov 4  }
 0x176   : > { %678 = dma.vmem_to_hbm [thread:$0]  (%p898_p4), %s947_s16, 256, %s945_s25, %s951_s21, %s826_s15, %s826_s15, %s827_s17  }
 0x177 PF: > { %p684_p0 = scmp.ge.s32.totalorder %s819_s23, 2  ;;  %s546_s24 = sand.u32 1, %s799_s18  }
 0x178   : > { %s547_s27 = scalar_lea.sflag [#allocation3], %s546_s24 }
 0x179   : > { %p681_p1 = pnand %p684_p0, %p905_p8 }
 0x17b   : > { %p682_p2 = pneg %p681_p1 }
 0x17d   : > { %794 = dma.done.wait (%p682_p2), %s547_s27, 256  }
 0x17e   : > { %796 = vsyncadd (%p682_p2), %s547_s27, 4294967040  ;;  %s18_s23 = sadd.s32 1, %s819_s23   ;;  %s1004_s18 = smov %s803_s19 }
 0x17f   : > { %p15_p3 = scmp.ge.s32.totalorder %s18_s23, 4   ;;  %s1005_s19 = smov %s807_s20 }
 0x180   : > { %s1006_s20 = smov %s911_s6  ;;  %s1007_s21 = smov %s815_s22 }
 0x181   : > { %s1008_s22 = smov %s1010_s26  ;;  %17 = sbr.rel (!%p15_p3) target bundleno = 4 (0x4), region = 78 }
 0x186   :  { %552 = vsyncpa [#allocation3], 1 }
 0x187   :  { %554 = vsyncpa [#allocation3 + $0x1], 1 }

</bundles_post_ra>
